<compile_context>
chip_gen: v7x
topology: tpu7x:2x2x1
jax: 0.10.0
libtpu: 0.0.40
codegen_flags: <defaults>
</compile_context>

<pallas_src>
import math

import jax
import jax.numpy as jnp
from jax.experimental import pallas as pl
from jax.experimental.pallas import tpu as pltpu


def _offsets(widths):
    offs, off = [], 0
    for w in widths:
        offs.append(off)
        off += w
    return offs, off


# ---------------------------------------------------------------------------
# Path 1: direct HBM->HBM DMA (128-aligned lane windows). No VMEM staging.
# ---------------------------------------------------------------------------
def _make_dma_concat_kernel(widths, row_chunks):
    offsets, _ = _offsets(widths)
    n_in = len(widths)
    max_inflight = 16  # keep the DMA queue bounded for very large input lists

    def kernel(*refs):
        in_refs = refs[:n_in]
        out_ref = refs[n_in]
        sem = refs[n_in + 1]
        pending = []
        for i, (r, o, w) in enumerate(zip(in_refs, offsets, widths)):
            for c, (start, rows) in enumerate(row_chunks):
                cp = pltpu.make_async_copy(
                    r.at[start:start + rows, :],
                    out_ref.at[start:start + rows, o:o + w],
                    sem.at[i, c],
                )
                cp.start()
                pending.append(cp)
                if len(pending) >= max_inflight:
                    pending.pop(0).wait()
        for cp in pending:
            cp.wait()

    return kernel


def _concat_dma(xs2d, out_width, outer, dtype, total_bytes):
    widths = [int(x.shape[1]) for x in xs2d]
    itemsize = jnp.dtype(dtype).itemsize

    # A few concurrent row-chunk DMAs per input help saturate HBM bandwidth;
    # each chunk should still move a decent amount of data.  Clamped duplicate
    # chunks (ragged tail) are deduped.
    min_chunk_bytes = 512 * 1024
    by_size = max(1, (outer * out_width * itemsize) // min_chunk_bytes)
    n_chunks = int(min(8, outer, by_size))
    chunk = int(pl.cdiv(outer, n_chunks))
    starts = sorted({min(c * chunk, outer - chunk) for c in range(n_chunks)})
    row_chunks = [(int(s), chunk) for s in starts]

    # TODO(synk): optionally shard row_chunks across v7x's two TensorCores via
    # a parallel grid axis if a single core's DMA issue rate ever binds.
    kernel = _make_dma_concat_kernel(widths, row_chunks)
    return pl.pallas_call(
        kernel,
        out_shape=jax.ShapeDtypeStruct((outer, out_width), dtype),
        grid=(1,),
        in_specs=[pl.BlockSpec(memory_space=pl.ANY)] * len(xs2d),
        out_specs=pl.BlockSpec(memory_space=pl.ANY),
        scratch_shapes=[pltpu.SemaphoreType.DMA((len(xs2d), len(row_chunks)))],
        compiler_params=pltpu.CompilerParams(
            dimension_semantics=("arbitrary",),
        ),
        cost_estimate=pl.CostEstimate(
            flops=0, transcendentals=0, bytes_accessed=2 * total_bytes),
    )(*xs2d)


# ---------------------------------------------------------------------------
# Path 2: auto-pipelined VMEM copy (unaligned lane windows).
# ---------------------------------------------------------------------------
def _make_copy_concat_kernel(widths):
    offsets, _ = _offsets(widths)

    def kernel(*refs):
        in_refs = refs[:-1]
        out_ref = refs[-1]
        for r, o, w in zip(in_refs, offsets, widths):
            out_ref[:, o:o + w] = r[...]

    return kernel


def _vmem_budget():
    try:
        cap = int(pltpu.get_tpu_info().vmem_capacity_bytes)
    except Exception:  # pragma: no cover - conservative default (v7x: 64 MiB)
        cap = 64 << 20
    # Live-tile budget and scoped-VMEM request leave headroom for Mosaic's
    # internal scratch (important on v7x where 64 MiB is the physical total).
    return max(8 << 20, int(cap * 0.35)), int(cap * 0.85)


def _concat_vmem(xs2d, out_width, outer, dtype, total_bytes):
    widths = [int(x.shape[1]) for x in xs2d]
    itemsize = jnp.dtype(dtype).itemsize
    sub = 8 * max(1, 4 // itemsize)  # sublane packing: f32->8, bf16->16, i8->32

    budget, vmem_cap_req = _vmem_budget()
    # live bytes per outer row: (sum input tiles + output tile), doubled by
    # the default Buffered(2) pipelining.
    bytes_per_row = 4 * out_width * itemsize
    if bytes_per_row > budget:
        # TODO(synk): tile the lane axis per-input for huge unaligned rows;
        # for now signal the caller to fall back rather than overflow VMEM.
        return None

    tile_outer = max(1, budget // bytes_per_row)
    if tile_outer >= outer:
        if outer >= 2 * sub:
            # keep >=2 grid steps so v7x's two TensorCores both get work
            tile_outer = ((int(pl.cdiv(outer, 2)) + sub - 1) // sub) * sub
        else:
            tile_outer = outer  # full-dim block: always legal
    else:
        tile_outer = max(sub, (tile_outer // sub) * sub)
    grid = (pl.cdiv(outer, tile_outer),)

    vmem_limit = int(min(vmem_cap_req,
                         max(32 << 20, tile_outer * bytes_per_row + (2 << 20))))

    kernel = _make_copy_concat_kernel(widths)
    return pl.pallas_call(
        kernel,
        out_shape=jax.ShapeDtypeStruct((outer, out_width), dtype),
        grid=grid,
        in_specs=[pl.BlockSpec((tile_outer, w), lambda i: (i, 0)) for w in widths],
        out_specs=pl.BlockSpec((tile_outer, out_width), lambda i: (i, 0)),
        compiler_params=pltpu.CompilerParams(
            dimension_semantics=("parallel",),
            vmem_limit_bytes=vmem_limit,
        ),
        cost_estimate=pl.CostEstimate(
            flops=0, transcendentals=0, bytes_accessed=2 * total_bytes),
    )(*xs2d)


# ---------------------------------------------------------------------------
# Dispatcher == TableModule.forward(x, dim)
# ---------------------------------------------------------------------------
def concat_pallas(xs, dim):
    """Pallas equivalent of torch.cat(xs, dim)."""
    xs = list(xs)
    if not xs:
        raise ValueError("concat_pallas: need at least one input")
    ndim = xs[0].ndim
    dim = dim % ndim
    dtype = xs[0].dtype
    ref_shape = xs[0].shape
    for x in xs:
        if x.dtype != dtype:
            raise ValueError("concat_pallas: all inputs must share a dtype")
        if x.ndim != ndim:
            raise ValueError("concat_pallas: all inputs must share the rank")
        for d in range(ndim):
            if d != dim and x.shape[d] != ref_shape[d]:
                raise ValueError("concat_pallas: non-concat dims must match")

    sizes = [int(x.shape[dim]) for x in xs]
    total = sum(sizes)
    out_shape_nd = tuple(total if d == dim else ref_shape[d] for d in range(ndim))

    outer = math.prod(ref_shape[:dim]) if dim > 0 else 1
    inner = math.prod(ref_shape[dim + 1:]) if dim < ndim - 1 else 1
    widths = [c * inner for c in sizes]
    offsets, out_width = _offsets(widths)

    # Lane-dense 2D views: (outer, C_i * inner). Free row-major reshape.
    xs2d = [x.reshape(outer, w) for x, w in zip(xs, widths)]
    itemsize = jnp.dtype(dtype).itemsize
    total_bytes = sum(int(x.size) for x in xs) * itemsize

    aligned = (all(w % 128 == 0 for w in widths)
               and all(o % 128 == 0 for o in offsets)
               and out_width > 0)

    if aligned:
        out2d = _concat_dma(xs2d, out_width, outer, dtype, total_bytes)
    else:
        out2d = _concat_vmem(xs2d, out_width, outer, dtype, total_bytes)
        if out2d is None:
            # Unaligned huge-row corner case: XLA's concat is already pure DMA.
            return jnp.concatenate(xs, axis=dim)

    return out2d.reshape(out_shape_nd)


if __name__ == "__main__":
    key = jax.random.PRNGKey(0)
    k0, k1, k2, k3 = jax.random.split(key, 4)

    # TableModule.forward(x, dim): x a tuple of NCHW tensors, dim=1 (channels)
    x0 = jax.random.normal(k0, (2, 4, 16, 16), dtype=jnp.float32)
    x1 = jax.random.normal(k1, (2, 6, 16, 16), dtype=jnp.float32)
    x2 = jax.random.normal(k2, (2, 2, 16, 16), dtype=jnp.float32)
    xs = (x0, x1, x2)

    y = jax.block_until_ready(concat_pallas(xs, dim=1))
    y_ref = jnp.concatenate(xs, axis=1)
    assert y.shape == y_ref.shape, (y.shape, y_ref.shape)
    assert jnp.array_equal(y, y_ref), "mismatch vs jnp.concatenate (dim=1)"

    # bf16 channel concat (aligned direct-DMA path, packed dtype)
    b0 = x0.astype(jnp.bfloat16)
    b1 = x1.astype(jnp.bfloat16)
    y_bf16 = jax.block_until_ready(concat_pallas((b0, b1), dim=1))
    assert jnp.array_equal(y_bf16, jnp.concatenate((b0, b1), axis=1)), "mismatch (bf16 dim=1)"

    # last-axis concat (sub-128 lane windows -> VMEM-staging path)
    x3 = jax.random.normal(k3, (2, 4, 16, 32), dtype=jnp.float32)
    y_last = jax.block_until_ready(concat_pallas((x0, x3), dim=-1))
    assert y_last.shape == (2, 4, 16, 48)
    assert jnp.array_equal(y_last, jnp.concatenate((x0, x3), axis=-1)), "mismatch (dim=-1)"

    # leading-axis concat (aligned direct-DMA path, outer == 1)
    y_lead = jax.block_until_ready(concat_pallas((x0, x0), dim=0))
    assert jnp.array_equal(y_lead, jnp.concatenate((x0, x0), axis=0)), "mismatch (dim=0)"

    print("KERNEL_OK")
</pallas_src>

<mosaic_0001>
module attributes {stable_mosaic.version = 11 : i64} {
  func.func @kernel(%arg0: i32, %arg1: memref<2x1024xf32, #tpu.memory_space<any>>, %arg2: memref<2x1536xf32, #tpu.memory_space<any>>, %arg3: memref<2x512xf32, #tpu.memory_space<any>>, %arg4: memref<2x3072xf32, #tpu.memory_space<any>>, %arg5: memref<3x1x!tpu.dma_semaphore, #tpu.memory_space<semaphore_mem>>) attributes {dimension_semantics = [#tpu.dimension_semantics<arbitrary>], iteration_bounds = array<i64: 1>, scalar_prefetch = 0 : i64, scratch_operands = 1 : i64, tpu.core_type = #tpu.core_type<tc>, window_params = [{}, {}, {}, {}]} {
    %c0_i32 = arith.constant 0 : i32
    %c0_i32_0 = arith.constant 0 : i32
    %c0_i32_1 = arith.constant 0 : i32
    %c0_i32_2 = arith.constant 0 : i32
    %0 = tpu.memref_slice %arg1[%c0_i32_1, %c0_i32_2] : memref<2x1024xf32, #tpu.memory_space<any>> -> memref<2x1024xf32, #tpu.memory_space<any>>
    %c0_i32_3 = arith.constant 0 : i32
    %c0_i32_4 = arith.constant 0 : i32
    %1 = tpu.memref_slice %arg4[%c0_i32_3, %c0_i32_4] : memref<2x3072xf32, #tpu.memory_space<any>> -> memref<2x1024xf32, #tpu.memory_space<any>>
    %2 = tpu.memref_slice %arg5[%c0_i32, %c0_i32_0] : memref<3x1x!tpu.dma_semaphore, #tpu.memory_space<semaphore_mem>> -> memref<1x1x!tpu.dma_semaphore, #tpu.memory_space<semaphore_mem>>
    %3 = tpu.memref_squeeze %2 : memref<1x1x!tpu.dma_semaphore, #tpu.memory_space<semaphore_mem>> -> memref<!tpu.dma_semaphore, #tpu.memory_space<semaphore_mem>>
    tpu.enqueue_dma source(%0 : memref<2x1024xf32, #tpu.memory_space<any>>) target(%1 : memref<2x1024xf32, #tpu.memory_space<any>>) target_semaphore(%3 : memref<!tpu.dma_semaphore, #tpu.memory_space<semaphore_mem>>)
    %c1_i32 = arith.constant 1 : i32
    %c0_i32_5 = arith.constant 0 : i32
    %c0_i32_6 = arith.constant 0 : i32
    %c0_i32_7 = arith.constant 0 : i32
    %4 = tpu.memref_slice %arg2[%c0_i32_6, %c0_i32_7] : memref<2x1536xf32, #tpu.memory_space<any>> -> memref<2x1536xf32, #tpu.memory_space<any>>
    %c0_i32_8 = arith.constant 0 : i32
    %c1024_i32 = arith.constant 1024 : i32
    %5 = tpu.memref_slice %arg4[%c0_i32_8, %c1024_i32] : memref<2x3072xf32, #tpu.memory_space<any>> -> memref<2x1536xf32, #tpu.memory_space<any>>
    %6 = tpu.memref_slice %arg5[%c1_i32, %c0_i32_5] : memref<3x1x!tpu.dma_semaphore, #tpu.memory_space<semaphore_mem>> -> memref<1x1x!tpu.dma_semaphore, #tpu.memory_space<semaphore_mem>>
    %7 = tpu.memref_squeeze %6 : memref<1x1x!tpu.dma_semaphore, #tpu.memory_space<semaphore_mem>> -> memref<!tpu.dma_semaphore, #tpu.memory_space<semaphore_mem>>
    tpu.enqueue_dma source(%4 : memref<2x1536xf32, #tpu.memory_space<any>>) target(%5 : memref<2x1536xf32, #tpu.memory_space<any>>) target_semaphore(%7 : memref<!tpu.dma_semaphore, #tpu.memory_space<semaphore_mem>>)
    %c2_i32 = arith.constant 2 : i32
    %c0_i32_9 = arith.constant 0 : i32
    %c0_i32_10 = arith.constant 0 : i32
    %c0_i32_11 = arith.constant 0 : i32
    %8 = tpu.memref_slice %arg3[%c0_i32_10, %c0_i32_11] : memref<2x512xf32, #tpu.memory_space<any>> -> memref<2x512xf32, #tpu.memory_space<any>>
    %c0_i32_12 = arith.constant 0 : i32
    %c2560_i32 = arith.constant 2560 : i32
    %9 = tpu.memref_slice %arg4[%c0_i32_12, %c2560_i32] : memref<2x3072xf32, #tpu.memory_space<any>> -> memref<2x512xf32, #tpu.memory_space<any>>
    %10 = tpu.memref_slice %arg5[%c2_i32, %c0_i32_9] : memref<3x1x!tpu.dma_semaphore, #tpu.memory_space<semaphore_mem>> -> memref<1x1x!tpu.dma_semaphore, #tpu.memory_space<semaphore_mem>>
    %11 = tpu.memref_squeeze %10 : memref<1x1x!tpu.dma_semaphore, #tpu.memory_space<semaphore_mem>> -> memref<!tpu.dma_semaphore, #tpu.memory_space<semaphore_mem>>
    tpu.enqueue_dma source(%8 : memref<2x512xf32, #tpu.memory_space<any>>) target(%9 : memref<2x512xf32, #tpu.memory_space<any>>) target_semaphore(%11 : memref<!tpu.dma_semaphore, #tpu.memory_space<semaphore_mem>>)
    %c0_i32_13 = arith.constant 0 : i32
    %c0_i32_14 = arith.constant 0 : i32
    %c0_i32_15 = arith.constant 0 : i32
    %c0_i32_16 = arith.constant 0 : i32
    %12 = tpu.memref_slice %arg1[%c0_i32_15, %c0_i32_16] : memref<2x1024xf32, #tpu.memory_space<any>> -> memref<2x1024xf32, #tpu.memory_space<any>>
    %c0_i32_17 = arith.constant 0 : i32
    %c0_i32_18 = arith.constant 0 : i32
    %13 = tpu.memref_slice %arg4[%c0_i32_17, %c0_i32_18] : memref<2x3072xf32, #tpu.memory_space<any>> -> memref<2x1024xf32, #tpu.memory_space<any>>
    %14 = tpu.memref_slice %arg5[%c0_i32_13, %c0_i32_14] : memref<3x1x!tpu.dma_semaphore, #tpu.memory_space<semaphore_mem>> -> memref<1x1x!tpu.dma_semaphore, #tpu.memory_space<semaphore_mem>>
    %15 = tpu.memref_squeeze %14 : memref<1x1x!tpu.dma_semaphore, #tpu.memory_space<semaphore_mem>> -> memref<!tpu.dma_semaphore, #tpu.memory_space<semaphore_mem>>
    tpu.wait_dma2 semaphore(%15 : memref<!tpu.dma_semaphore, #tpu.memory_space<semaphore_mem>>) src(%12 : memref<2x1024xf32, #tpu.memory_space<any>>) dst(%13 : memref<2x1024xf32, #tpu.memory_space<any>>)
    %c1_i32_19 = arith.constant 1 : i32
    %c0_i32_20 = arith.constant 0 : i32
    %c0_i32_21 = arith.constant 0 : i32
    %c0_i32_22 = arith.constant 0 : i32
    %16 = tpu.memref_slice %arg2[%c0_i32_21, %c0_i32_22] : memref<2x1536xf32, #tpu.memory_space<any>> -> memref<2x1536xf32, #tpu.memory_space<any>>
    %c0_i32_23 = arith.constant 0 : i32
    %c1024_i32_24 = arith.constant 1024 : i32
    %17 = tpu.memref_slice %arg4[%c0_i32_23, %c1024_i32_24] : memref<2x3072xf32, #tpu.memory_space<any>> -> memref<2x1536xf32, #tpu.memory_space<any>>
    %18 = tpu.memref_slice %arg5[%c1_i32_19, %c0_i32_20] : memref<3x1x!tpu.dma_semaphore, #tpu.memory_space<semaphore_mem>> -> memref<1x1x!tpu.dma_semaphore, #tpu.memory_space<semaphore_mem>>
    %19 = tpu.memref_squeeze %18 : memref<1x1x!tpu.dma_semaphore, #tpu.memory_space<semaphore_mem>> -> memref<!tpu.dma_semaphore, #tpu.memory_space<semaphore_mem>>
    tpu.wait_dma2 semaphore(%19 : memref<!tpu.dma_semaphore, #tpu.memory_space<semaphore_mem>>) src(%16 : memref<2x1536xf32, #tpu.memory_space<any>>) dst(%17 : memref<2x1536xf32, #tpu.memory_space<any>>)
    %c2_i32_25 = arith.constant 2 : i32
    %c0_i32_26 = arith.constant 0 : i32
    %c0_i32_27 = arith.constant 0 : i32
    %c0_i32_28 = arith.constant 0 : i32
    %20 = tpu.memref_slice %arg3[%c0_i32_27, %c0_i32_28] : memref<2x512xf32, #tpu.memory_space<any>> -> memref<2x512xf32, #tpu.memory_space<any>>
    %c0_i32_29 = arith.constant 0 : i32
    %c2560_i32_30 = arith.constant 2560 : i32
    %21 = tpu.memref_slice %arg4[%c0_i32_29, %c2560_i32_30] : memref<2x3072xf32, #tpu.memory_space<any>> -> memref<2x512xf32, #tpu.memory_space<any>>
    %22 = tpu.memref_slice %arg5[%c2_i32_25, %c0_i32_26] : memref<3x1x!tpu.dma_semaphore, #tpu.memory_space<semaphore_mem>> -> memref<1x1x!tpu.dma_semaphore, #tpu.memory_space<semaphore_mem>>
    %23 = tpu.memref_squeeze %22 : memref<1x1x!tpu.dma_semaphore, #tpu.memory_space<semaphore_mem>> -> memref<!tpu.dma_semaphore, #tpu.memory_space<semaphore_mem>>
    tpu.wait_dma2 semaphore(%23 : memref<!tpu.dma_semaphore, #tpu.memory_space<semaphore_mem>>) src(%20 : memref<2x512xf32, #tpu.memory_space<any>>) dst(%21 : memref<2x512xf32, #tpu.memory_space<any>>)
    return
  }
}

</mosaic_0001>

<bundles_post_ra>
// kernel: tpu_custom_call.1
= control target key start
LH: loop header
LB: loop body
LE: loop exit
PB: predicated region body
PF: predicated region fallthrough
CT: control target
= control target key end

     0   :  { %s97_s15 = smov [#allocation2]   ;;  %s98_s16 = smov [#allocation3]   ;;  %s142_s0 = inlined_call_operand.hbm [shape: f32[2,1024], index: 0, kind: input, shape index: {}]   ;;  %s143_s3 = inlined_call_operand.hbm [shape: f32[2,3072], index: 3, kind: output, shape index: {}]   ;;  %s144_s1 = inlined_call_operand.hbm [shape: f32[2,1536], index: 1, kind: input, shape index: {}]   ;;  %s145_s2 = inlined_call_operand.hbm [shape: f32[2,512], index: 2, kind: input, shape index: {}]  }
   0x1   :  { %s21_s14 = scalar_lea.hbm %s143_s3, 256  ;;  %s99_s17 = smov 0  }
   0x2   :  { %20 = dma.general %s142_s0, 256, %s143_s3, %s97_s15, %s98_s16, [#allocation4], %s99_s17, 0  }
   0x3   :  { %s36_s24 = scalar_lea.hbm %s143_s3, 640  ;;  %s100_s25 = smov [#allocation2 + $0x1]  }
   0x4   :  { %s101_s26 = smov [#allocation5]   ;;  %s102_s29 = smov [#allocation2 + $0x2]  }
   0x5   :  { %35 = dma.general %s144_s1, 384, %s21_s14, %s100_s25, %s101_s26, [#allocation6], %s99_s17, 0  }
   0x6   :  { %s103_s30 = smov [#allocation7]  }
   0x7   :  { %50 = dma.general %s145_s2, 128, %s36_s24, %s102_s29, %s103_s30, [#allocation8], %s99_s17, 0  }
   0x8   :  { %91 = dma.done.wait [#allocation2], 256 }
   0x9   :  { %92 = vsyncadd [#allocation2], 4294967040 }
   0xa   :  { %93 = dma.done.wait [#allocation2 + $0x1], 384 }
   0xb   :  { %94 = vsyncadd [#allocation2 + $0x1], 4294966912 }
   0xc   :  { %95 = dma.done.wait [#allocation2 + $0x2], 128 }
   0xd   :  { %96 = vsyncadd [#allocation2 + $0x2], 4294967168 }
   0xe   :  { %61 = vsyncmov [#allocation2] }
  0x11   :  { %s62_s0 = vpop.sfrf %61 }
  0x12   :  { %p81_p0 = scmp.ne.s32.totalorder %s62_s0, 0 }
  0x14   :  { %66 = shalt.err (%p81_p0)  }
  0x15   :  { %68 = vsyncmov [#allocation2 + $0x1] }
  0x18   :  { %s69_s3 = vpop.sfrf %68 }
  0x19   :  { %p82_p1 = scmp.ne.s32.totalorder %s69_s3, 0 }
  0x1b   :  { %73 = shalt.err (%p82_p1)  }
  0x1c   :  { %75 = vsyncmov [#allocation2 + $0x2] }
  0x1f   :  { %s76_s1 = vpop.sfrf %75 }
  0x20   :  { %p83_p2 = scmp.ne.s32.totalorder %s76_s1, 0 }
  0x22   :  { %80 = shalt.err (%p83_p2)  }

</bundles_post_ra>
